<compile_context>
chip_gen: v6e
topology: v6e:2x2x1
jax: 0.10.0
libtpu: 0.0.40
codegen_flags: <defaults>
</compile_context>

<pallas_src>
import functools

import jax
import jax.numpy as jnp
from jax.experimental import pallas as pl
from jax.experimental.pallas import tpu as pltpu


def _round_up(x, m):
    return ((x + m - 1) // m) * m


# ----------------------------- Pallas kernels ------------------------------


def _matmul_stats_kernel(a_ref, b_ref, out_ref, stats_ref, acc_ref):
    """Conv-as-matmul tile with fused per-channel sum / sum-of-squares.

    Grid: (M tiles [parallel], K tiles [arbitrary/reduction]).
    acc_ref: f32 VMEM scratch accumulator (persists across the K axis).
    out_ref: bf16 conv output tile, written once in the finalize step.
    stats_ref: per-M-tile (8, Cout_pad) slab: row 0 = sum, row 1 = sum(x^2),
               computed from the f32 accumulator (full precision).
    """
    k_idx = pl.program_id(1)

    @pl.when(k_idx == 0)
    def _init():
        acc_ref[...] = jnp.zeros_like(acc_ref)

    acc_ref[...] += jnp.dot(
        a_ref[...], b_ref[...], preferred_element_type=jnp.float32
    )

    @pl.when(k_idx == pl.num_programs(1) - 1)
    def _finalize():
        acc = acc_ref[...]
        out_ref[...] = acc.astype(out_ref.dtype)
        s = jnp.sum(acc, axis=0, keepdims=True)          # (1, C)
        sq = jnp.sum(acc * acc, axis=0, keepdims=True)   # (1, C)
        rows = jax.lax.broadcasted_iota(jnp.int32, stats_ref.shape, 0)
        stats_ref[...] = (
            jnp.where(rows == 0, s, 0.0) + jnp.where(rows == 1, sq, 0.0)
        )


def _bn_relu_to_nchw_kernel(x_ref, scale_ref, bias_ref, o_ref):
    """y = max(x * scale + bias, 0), then write channel-major (C, HW) block.

    x_ref:     (1, t_sp, Cout_pad) bf16 conv output tile (one image slice).
    scale/bias:(1, Cout_pad) f32 per-channel affine (precomputed).
    o_ref:     (1, Cout, t_sp) f32 — already NCHW-ordered, only real channels.
    """
    x = x_ref[0].astype(jnp.float32)                         # (t_sp, C_pad)
    y = jnp.maximum(x * scale_ref[...] + bias_ref[...], 0.0)  # (t_sp, C_pad)
    yt = jnp.transpose(y)                                     # (C_pad, t_sp)
    o_ref[0] = yt[: o_ref.shape[1], :]                        # keep real Cout


# ------------------------------ host wrapper -------------------------------


def _im2col_nhwc_bf16(x_nhwc_bf16, kh, kw, stride, padding, dilation):
    """Extract conv patches (all in bf16).  Returns ([N,OH,OW,KH*KW*Cin], OH, OW)."""
    n, h, w, c = x_nhwc_bf16.shape
    xp = jnp.pad(
        x_nhwc_bf16, ((0, 0), (padding, padding), (padding, padding), (0, 0))
    )
    hp, wp = h + 2 * padding, w + 2 * padding
    oh = (hp - dilation * (kh - 1) - 1) // stride + 1
    ow = (wp - dilation * (kw - 1) - 1) // stride + 1
    cols = []
    for i in range(kh):
        for j in range(kw):
            r0, c0 = i * dilation, j * dilation
            sl = xp[:, r0 : r0 + (oh - 1) * stride + 1 : stride,
                    c0 : c0 + (ow - 1) * stride + 1 : stride, :]
            cols.append(sl)  # each (N, OH, OW, Cin), bf16
    return jnp.concatenate(cols, axis=-1), oh, ow


@functools.partial(jax.jit, static_argnames=("stride", "padding", "dilation"))
def conv_block_forward(x_nchw, weight, gamma, beta, *, stride, padding, dilation):
    """ConvBlock forward.  x_nchw: [N, Cin, H, W], weight: [Cout, Cin, KH, KW]."""
    cout, cin, kh, kw = weight.shape
    n = x_nchw.shape[0]

    # NCHW -> NHWC in bf16 (cast first so the transpose/pad/concat are bf16).
    x_nhwc = jnp.transpose(x_nchw.astype(jnp.bfloat16), (0, 2, 3, 1))

    # TODO(synk): replace the materialized im2col with a kh*kw reduction of
    # shifted in-kernel reads of the padded NHWC input (reads x once).
    patches, oh, ow = _im2col_nhwc_bf16(x_nhwc, kh, kw, stride, padding, dilation)

    ohw = oh * ow
    k = kh * kw * cin
    cout_pad = _round_up(cout, 128)

    # Spatial tile: multiple of 128 (lane-dense y stores, bf16-safe sublanes);
    # M is padded PER IMAGE so the final NCHW reshape is free.
    t_sp = min(512, _round_up(ohw, 128))
    ohw_pad = _round_up(ohw, t_sp)
    m_pad = n * ohw_pad
    m_tiles = m_pad // t_sp

    # K tiling: keep B fully resident (single K tile, constant block index)
    # when it comfortably fits VMEM; otherwise fall back to K tiling.
    k_pad = _round_up(k, 128)
    if k_pad * cout_pad * 2 <= 4 * 1024 * 1024:
        tk = k_pad
    else:
        tk = 512
        k_pad = _round_up(k_pad, tk)
    k_tiles = k_pad // tk

    # A: [N*OHW_pad, K_pad] bf16 patches (per-image row padding).
    a = patches.reshape(n, ohw, k)
    a = jnp.pad(a, ((0, 0), (0, ohw_pad - ohw), (0, k_pad - k)))
    a = a.reshape(m_pad, k_pad)

    # B: [K_pad, Cout_pad] bf16; (kh, kw, cin) ordering matches the patches.
    b = jnp.transpose(weight, (2, 3, 1, 0)).reshape(k, cout)
    b = jnp.pad(b, ((0, k_pad - k), (0, cout_pad - cout))).astype(jnp.bfloat16)

    # ----- conv matmul (f32 scratch acc, bf16 output) + fused channel stats --
    conv_out, stats = pl.pallas_call(
        _matmul_stats_kernel,
        out_shape=(
            jax.ShapeDtypeStruct((m_pad, cout_pad), jnp.bfloat16),
            jax.ShapeDtypeStruct((m_tiles * 8, cout_pad), jnp.float32),
        ),
        grid_spec=pltpu.PrefetchScalarGridSpec(
            num_scalar_prefetch=0,
            grid=(m_tiles, k_tiles),
            in_specs=[
                pl.BlockSpec((t_sp, tk), lambda i, kk: (i, kk)),
                pl.BlockSpec((tk, cout_pad), lambda i, kk: (kk, 0)),
            ],
            out_specs=[
                pl.BlockSpec((t_sp, cout_pad), lambda i, kk: (i, 0)),
                pl.BlockSpec((8, cout_pad), lambda i, kk: (i, 0)),
            ],
            scratch_shapes=[pltpu.VMEM((t_sp, cout_pad), jnp.float32)],
        ),
        compiler_params=pltpu.CompilerParams(
            dimension_semantics=("parallel", "arbitrary"),
        ),
    )(a, b)

    # ----- BatchNorm statistics (train mode, biased var, eps=1e-5) ----------
    # Padded rows/channels contributed zeros; divide by the real count.
    stats = stats.reshape(m_tiles, 8, cout_pad)
    ch_sum = jnp.sum(stats[:, 0, :], axis=0)
    ch_sumsq = jnp.sum(stats[:, 1, :], axis=0)
    count = jnp.float32(n * ohw)
    mean = ch_sum / count
    var = jnp.maximum(ch_sumsq / count - mean * mean, 0.0)
    inv_std = jax.lax.rsqrt(var + 1e-5)

    gamma_pad = jnp.pad(gamma.astype(jnp.float32), (0, cout_pad - cout))
    beta_pad = jnp.pad(beta.astype(jnp.float32), (0, cout_pad - cout))
    scale = (gamma_pad * inv_std).reshape(1, cout_pad)
    bias = (beta_pad - mean * gamma_pad * inv_std).reshape(1, cout_pad)

    # ----- fused BN apply + ReLU + channel-major (NCHW) writeback ------------
    conv_out_img = conv_out.reshape(n, ohw_pad, cout_pad)   # free reshape
    hw_tiles = ohw_pad // t_sp

    y = pl.pallas_call(
        _bn_relu_to_nchw_kernel,
        out_shape=jax.ShapeDtypeStruct((n, cout, ohw_pad), jnp.float32),
        grid_spec=pltpu.PrefetchScalarGridSpec(
            num_scalar_prefetch=0,
            grid=(n, hw_tiles),
            in_specs=[
                pl.BlockSpec((1, t_sp, cout_pad), lambda b_, t: (b_, t, 0)),
                pl.BlockSpec((1, cout_pad), lambda b_, t: (0, 0)),
                pl.BlockSpec((1, cout_pad), lambda b_, t: (0, 0)),
            ],
            out_specs=pl.BlockSpec((1, cout, t_sp), lambda b_, t: (b_, 0, t)),
        ),
        compiler_params=pltpu.CompilerParams(
            dimension_semantics=("parallel", "parallel"),
        ),
    )(conv_out_img, scale, bias)

    # Output is already channel-major; this is a pure (free when ohw_pad==ohw)
    # slice+reshape, no transpose pass.
    return y[:, :, :ohw].reshape(n, cout, oh, ow)


# ------------------------------- test driver -------------------------------

if __name__ == "__main__":
    # ConvBlock(in_planes=4, out_planes=8, kernel_size=3, stride=1, padding=1,
    #           dilation=1, groups=1, relu=True, bn=True, bias=False)
    N, Cin, H, W = 2, 4, 16, 16
    Cout, KH, KW = 8, 3, 3
    stride, padding, dilation = 1, 1, 1

    key = jax.random.PRNGKey(0)
    kx, kw_, kg, kb = jax.random.split(key, 4)
    x = jax.random.normal(kx, (N, Cin, H, W), dtype=jnp.float32)
    weight = 0.1 * jax.random.normal(kw_, (Cout, Cin, KH, KW), dtype=jnp.float32)
    gamma = 1.0 + 0.1 * jax.random.normal(kg, (Cout,), dtype=jnp.float32)
    beta = 0.1 * jax.random.normal(kb, (Cout,), dtype=jnp.float32)

    out = conv_block_forward(
        x, weight, gamma, beta, stride=stride, padding=padding, dilation=dilation
    )
    out = jax.block_until_ready(out)

    # Plain-JAX f32 reference (conv -> train-mode BN -> ReLU).
    conv_ref = jax.lax.conv_general_dilated(
        x, weight, window_strides=(stride, stride),
        padding=[(padding, padding), (padding, padding)],
        rhs_dilation=(dilation, dilation),
        dimension_numbers=("NCHW", "OIHW", "NCHW"))
    mu = conv_ref.mean(axis=(0, 2, 3), keepdims=True)
    va = conv_ref.var(axis=(0, 2, 3), keepdims=True)
    ref = (conv_ref - mu) * jax.lax.rsqrt(va + 1e-5)
    ref = ref * gamma.reshape(1, -1, 1, 1) + beta.reshape(1, -1, 1, 1)
    ref = jnp.maximum(ref, 0.0)

    assert out.shape == (N, Cout, H, W), out.shape
    assert bool(jnp.all(out >= 0.0))  # ReLU
    max_err = float(jnp.max(jnp.abs(out - ref)))
    assert max_err < 0.1, f"max abs err vs reference: {max_err}"
    print("KERNEL_OK")
</pallas_src>

<mosaic_0001>
module attributes {stable_mosaic.version = 11 : i64} {
  func.func @_matmul_stats_kernel(%arg0: i32, %arg1: i32, %arg2: memref<256x128xbf16, #tpu.memory_space<vmem>>, %arg3: memref<128x128xbf16, #tpu.memory_space<vmem>>, %arg4: memref<256x128xbf16, #tpu.memory_space<vmem>>, %arg5: memref<8x128xf32, #tpu.memory_space<vmem>>, %arg6: memref<256x128xf32, #tpu.memory_space<vmem>>) attributes {dimension_semantics = [#tpu.dimension_semantics<parallel>, #tpu.dimension_semantics<arbitrary>], iteration_bounds = array<i64: 2, 1>, scalar_prefetch = 0 : i64, scratch_operands = 1 : i64, tpu.core_type = #tpu.core_type<tc>, window_params = [{transform_indices = @transform_0, window_bounds = array<i64: 256, 128>}, {transform_indices = @transform_1, window_bounds = array<i64: 128, 128>}, {transform_indices = @transform_2, window_bounds = array<i64: 256, 128>}, {transform_indices = @transform_3, window_bounds = array<i64: 8, 128>}]} {
    %c0_i32 = arith.constant 0 : i32
    %0 = arith.cmpi eq, %arg1, %c0_i32 : i32
    %1 = arith.extui %0 : i1 to i32
    %c0_i32_0 = arith.constant 0 : i32
    %2 = arith.cmpi ne, %1, %c0_i32_0 : i32
    scf.if %2 {
      %cst_10 = arith.constant 0.000000e+00 : f32
      %12 = vector.broadcast %cst_10 : f32 to vector<256x128xf32>
      %c0_11 = arith.constant 0 : index
      %c0_12 = arith.constant 0 : index
      %13 = vector.load %arg6[%c0_11, %c0_12] : memref<256x128xf32, #tpu.memory_space<vmem>>, vector<256x128xf32>
      tpu.vector_store %arg6[%c0_11, %c0_12], %12 {strides = array<i32>} : memref<256x128xf32, #tpu.memory_space<vmem>>, vector<256x128xf32>,
    } else {
    }
    %c0 = arith.constant 0 : index
    %c0_1 = arith.constant 0 : index
    %3 = vector.load %arg6[%c0, %c0_1] : memref<256x128xf32, #tpu.memory_space<vmem>>, vector<256x128xf32>
    %c0_2 = arith.constant 0 : index
    %c0_3 = arith.constant 0 : index
    %4 = vector.load %arg2[%c0_2, %c0_3] : memref<256x128xbf16, #tpu.memory_space<vmem>>, vector<256x128xbf16>
    %c0_4 = arith.constant 0 : index
    %c0_5 = arith.constant 0 : index
    %5 = vector.load %arg3[%c0_4, %c0_5] : memref<128x128xbf16, #tpu.memory_space<vmem>>, vector<128x128xbf16>
    %cst = arith.constant dense<0.000000e+00> : vector<256x128xf32>
    %6 = tpu.matmul %4, %5, %cst {dimension_numbers = #tpu.dot_dimension_numbers<[1], [0], [0], [1], [0, 0, 1, 1], [], []>} : vector<256x128xbf16>, vector<128x128xbf16>, vector<256x128xf32> -> vector<256x128xf32>
    %7 = arith.addf %3, %6 : vector<256x128xf32>
    %c0_6 = arith.constant 0 : index
    %c0_7 = arith.constant 0 : index
    %8 = vector.load %arg6[%c0_6, %c0_7] : memref<256x128xf32, #tpu.memory_space<vmem>>, vector<256x128xf32>
    tpu.vector_store %arg6[%c0_6, %c0_7], %7 {strides = array<i32>} : memref<256x128xf32, #tpu.memory_space<vmem>>, vector<256x128xf32>,
    %c0_i32_8 = arith.constant 0 : i32
    %9 = arith.cmpi eq, %arg1, %c0_i32_8 : i32
    %10 = arith.extui %9 : i1 to i32
    %c0_i32_9 = arith.constant 0 : i32
    %11 = arith.cmpi ne, %10, %c0_i32_9 : i32
    scf.if %11 {
      %c0_10 = arith.constant 0 : index
      %c0_11 = arith.constant 0 : index
      %12 = vector.load %arg6[%c0_10, %c0_11] : memref<256x128xf32, #tpu.memory_space<vmem>>, vector<256x128xf32>
      %13 = arith.truncf %12 : vector<256x128xf32> to vector<256x128xbf16>
      %c0_12 = arith.constant 0 : index
      %c0_13 = arith.constant 0 : index
      %14 = vector.load %arg4[%c0_12, %c0_13] : memref<256x128xbf16, #tpu.memory_space<vmem>>, vector<256x128xbf16>
      tpu.vector_store %arg4[%c0_12, %c0_13], %13 {strides = array<i32>} : memref<256x128xbf16, #tpu.memory_space<vmem>>, vector<256x128xbf16>,
      %cst_14 = arith.constant dense<0.000000e+00> : vector<128xf32>
      %15 = vector.multi_reduction <add>, %12, %cst_14 [0] : vector<256x128xf32> to vector<128xf32>
      %16 = vector.shape_cast %15 : vector<128xf32> to vector<1x128xf32>
      %17 = arith.mulf %12, %12 : vector<256x128xf32>
      %cst_15 = arith.constant dense<0.000000e+00> : vector<128xf32>
      %18 = vector.multi_reduction <add>, %17, %cst_15 [0] : vector<256x128xf32> to vector<128xf32>
      %19 = vector.shape_cast %18 : vector<128xf32> to vector<1x128xf32>
      %20 = tpu.iota {dimensions = array<i32: 0>} : vector<8x128xi32>
      %c0_i32_16 = arith.constant 0 : i32
      %21 = vector.broadcast %c0_i32_16 : i32 to vector<8x128xi32>
      %22 = arith.cmpi eq, %20, %21 : vector<8x128xi32>
      %cst_17 = arith.constant 0.000000e+00 : f32
      %23 = vector.shape_cast %16 : vector<1x128xf32> to vector<1x128xf32>
      %24 = vector.broadcast %23 : vector<1x128xf32> to vector<8x128xf32>
      %25 = vector.broadcast %cst_17 : f32 to vector<8x128xf32>
      %26 = arith.select %22, %24, %25 : vector<8x128xi1>, vector<8x128xf32>
      %c1_i32 = arith.constant 1 : i32
      %27 = vector.broadcast %c1_i32 : i32 to vector<8x128xi32>
      %28 = arith.cmpi eq, %20, %27 : vector<8x128xi32>
      %cst_18 = arith.constant 0.000000e+00 : f32
      %29 = vector.shape_cast %19 : vector<1x128xf32> to vector<1x128xf32>
      %30 = vector.broadcast %29 : vector<1x128xf32> to vector<8x128xf32>
      %31 = vector.broadcast %cst_18 : f32 to vector<8x128xf32>
      %32 = arith.select %28, %30, %31 : vector<8x128xi1>, vector<8x128xf32>
      %33 = arith.addf %26, %32 : vector<8x128xf32>
      %c0_19 = arith.constant 0 : index
      %c0_20 = arith.constant 0 : index
      %34 = vector.load %arg5[%c0_19, %c0_20] : memref<8x128xf32, #tpu.memory_space<vmem>>, vector<8x128xf32>
      tpu.vector_store %arg5[%c0_19, %c0_20], %33 {strides = array<i32>} : memref<8x128xf32, #tpu.memory_space<vmem>>, vector<8x128xf32>,
    } else {
    }
    return
  }
  func.func @transform_0(%arg0: i32, %arg1: i32) -> (i32, i32) {
    %c0_i32 = arith.constant 0 : i32
    return %arg0, %arg1 : i32, i32
  }
  func.func @transform_1(%arg0: i32, %arg1: i32) -> (i32, i32) {
    %c0_i32 = arith.constant 0 : i32
    %c0_i32_0 = arith.constant 0 : i32
    return %arg1, %c0_i32 : i32, i32
  }
  func.func @transform_2(%arg0: i32, %arg1: i32) -> (i32, i32) {
    %c0_i32 = arith.constant 0 : i32
    %c0_i32_0 = arith.constant 0 : i32
    return %arg0, %c0_i32 : i32, i32
  }
  func.func @transform_3(%arg0: i32, %arg1: i32) -> (i32, i32) {
    %c0_i32 = arith.constant 0 : i32
    %c0_i32_0 = arith.constant 0 : i32
    return %arg0, %c0_i32 : i32, i32
  }
}

module attributes {stable_mosaic.version = 11 : i64} {
  func.func @_bn_relu_to_nchw_kernel(%arg0: i32, %arg1: i32, %arg2: memref<1x256x128xbf16, #tpu.memory_space<vmem>>, %arg3: memref<1x128xf32, #tpu.memory_space<vmem>>, %arg4: memref<1x128xf32, #tpu.memory_space<vmem>>, %arg5: memref<1x8x256xf32, #tpu.memory_space<vmem>>) attributes {dimension_semantics = [#tpu.dimension_semantics<parallel>, #tpu.dimension_semantics<parallel>], iteration_bounds = array<i64: 2, 1>, scalar_prefetch = 0 : i64, scratch_operands = 0 : i64, tpu.core_type = #tpu.core_type<tc>, window_params = [{transform_indices = @transform_0, window_bounds = array<i64: 1, 256, 128>}, {pipeline_mode = #tpu.pipeline_mode<synchronous>, transform_indices = @transform_1, window_bounds = array<i64: 1, 128>}, {pipeline_mode = #tpu.pipeline_mode<synchronous>, transform_indices = @transform_2, window_bounds = array<i64: 1, 128>}, {transform_indices = @transform_3, window_bounds = array<i64: 1, 8, 256>}]} {
    %c0 = arith.constant 0 : index
    %c0_0 = arith.constant 0 : index
    %c0_1 = arith.constant 0 : index
    %0 = vector.load %arg2[%c0, %c0_0, %c0_1] : memref<1x256x128xbf16, #tpu.memory_space<vmem>>, vector<1x256x128xbf16>
    %1 = vector.shape_cast %0 : vector<1x256x128xbf16> to vector<256x128xbf16>
    %2 = arith.extf %1 : vector<256x128xbf16> to vector<256x128xf32>
    %c0_2 = arith.constant 0 : index
    %c0_3 = arith.constant 0 : index
    %3 = vector.load %arg3[%c0_2, %c0_3] : memref<1x128xf32, #tpu.memory_space<vmem>>, vector<1x128xf32>
    %4 = vector.broadcast %3 : vector<1x128xf32> to vector<256x128xf32>
    %5 = arith.mulf %2, %4 : vector<256x128xf32>
    %c0_4 = arith.constant 0 : index
    %c0_5 = arith.constant 0 : index
    %6 = vector.load %arg4[%c0_4, %c0_5] : memref<1x128xf32, #tpu.memory_space<vmem>>, vector<1x128xf32>
    %7 = vector.broadcast %6 : vector<1x128xf32> to vector<256x128xf32>
    %8 = arith.addf %5, %7 : vector<256x128xf32>
    %cst = arith.constant 0.000000e+00 : f32
    %9 = vector.broadcast %cst : f32 to vector<256x128xf32>
    %10 = arith.maximumf %8, %9 : vector<256x128xf32>
    %11 = tpu.transpose %10, [1, 0] : vector<256x128xf32> -> vector<128x256xf32>
    %12 = vector.extract_strided_slice %11 {offsets = [0, 0], sizes = [8, 256], strides = [1, 1]} : vector<128x256xf32> to vector<8x256xf32>
    %c0_6 = arith.constant 0 : index
    %c0_7 = arith.constant 0 : index
    %c0_8 = arith.constant 0 : index
    %13 = vector.load %arg5[%c0_6, %c0_7, %c0_8] : memref<1x8x256xf32, #tpu.memory_space<vmem>>, vector<1x8x256xf32>
    %14 = vector.shape_cast %13 : vector<1x8x256xf32> to vector<8x256xf32>
    %15 = vector.shape_cast %12 : vector<8x256xf32> to vector<1x8x256xf32>
    tpu.vector_store %arg5[%c0_6, %c0_7, %c0_8], %15 {strides = array<i32>} : memref<1x8x256xf32, #tpu.memory_space<vmem>>, vector<1x8x256xf32>,
    return
  }
  func.func @transform_0(%arg0: i32, %arg1: i32) -> (i32, i32, i32) {
    %c0_i32 = arith.constant 0 : i32
    %c0_i32_0 = arith.constant 0 : i32
    return %arg0, %arg1, %c0_i32 : i32, i32, i32
  }
  func.func @transform_1(%arg0: i32, %arg1: i32) -> (i32, i32) {
    %c0_i32 = arith.constant 0 : i32
    %c0_i32_0 = arith.constant 0 : i32
    %c0_i32_1 = arith.constant 0 : i32
    return %c0_i32, %c0_i32_0 : i32, i32
  }
  func.func @transform_2(%arg0: i32, %arg1: i32) -> (i32, i32) {
    %c0_i32 = arith.constant 0 : i32
    %c0_i32_0 = arith.constant 0 : i32
    %c0_i32_1 = arith.constant 0 : i32
    return %c0_i32, %c0_i32_0 : i32, i32
  }
  func.func @transform_3(%arg0: i32, %arg1: i32) -> (i32, i32, i32) {
    %c0_i32 = arith.constant 0 : i32
    %c0_i32_0 = arith.constant 0 : i32
    return %arg0, %c0_i32, %arg1 : i32, i32, i32
  }
}

</mosaic_0001>

<bundles_post_ra>
// kernel: conv_block_forward.2
= control target key start
LH: loop header
LB: loop body
LE: loop exit
PB: predicated region body
PF: predicated region fallthrough
CT: control target
= control target key end

     0   :  { %s1515_s12 = smov 0   ;;  %s1517_s13 = smov 0   ;;  %s1713_s0 = inlined_call_operand.vmem [shape: bf16[512,128], index: 0, kind: input, shape index: {}]   ;;  %s1714_s1 = inlined_call_operand.vmem [shape: bf16[128,128], index: 1, kind: input, shape index: {}]   ;;  %s1715_s2 = inlined_call_operand.vmem [shape: bf16[512,128], index: 2, kind: output, shape index: {0}]   ;;  %s1716_s3 = inlined_call_operand.vmem [shape: f32[16,128], index: 3, kind: output, shape index: {1}]  }
   0x1   :  { %s1519_s14 = smov 0  }
   0x2 LB: > { %s26_s15 = sadd.s32 1, %s1489_s13  ;;  %p1144_p0 = scmp.ge.s32.totalorder %s1493_s14, 1  ;;  %s1493_s14 = sphi %s1519_s14, %s14_s14   ;;  %s1489_s13 = sphi %s1517_s13, %s1718_s13   ;;  %s1485_s12 = sphi %s1515_s12, %s1717_s12  }
   0x3   : > { %p28_p1 = scmp.ge.s32.totalorder %s26_s15, 2  ;;  %p169_p2 = scmp.lt.s32.totalorder %s1493_s14, 3 }
   0x5   : > { %s1720_s15 = smov (%p28_p1, %s26_s15), 0  ;;  %p170_p3 = pnand %p1144_p0, %p169_p2 }
   0x6   : > { %s1145_s18 = sshll.u32 (!%p170_p3), %s1485_s12, 5  ;;  %p226_p5 = scmp.lt.s32.totalorder (!%p170_p3), %s1485_s12, 1 }
   0x7   : > { %173 = sbr.rel (%p170_p3) target bundleno = 324 (0x144), region = 28  ;;  %p206_p4 = scmp.lt.s32.totalorder (!%p170_p3), %s1145_s18, 63 }
   0xc   : > { %v1447_v0 = vld [vmem:[%s1714_s1 + $0x38] sm:$0xff]   ;;  %v1448_v1 = vld [vmem:[%s1714_s1 + $0x30] sm:$0xff]   ;;  %s1722_s18 = smov (!%p206_p4, %s1145_s18), 63  ;;  %v1449_v2 = vld [vmem:[%s1714_s1 + $0x28] sm:$0xff]   ;;  %s1724_s12 = smov (!%p226_p5, %s1485_s12), 1 }
   0xd   : > { %1359 = vmatprep.subr.bf16.mxu0 %v1447_v0  ;;  %1407 = vmatprep.subr.bf16.mxu1 %v1447_v0  ;;  %s1146_s23 = sshll.u32 %s1722_s18, 2  ;;  %v1450_v3 = vld [vmem:[%s1714_s1 + $0x20] sm:$0xff]   ;;  %v1451_v5 = vld [vmem:[%s1714_s1 + $0x18] sm:$0xff]   ;;  %v1452_v6 = vld [vmem:[%s1714_s1 + $0x10] sm:$0xff]   ;;  %s1149_s17 = sshll.u32 %s1724_s12, 3 }
   0xe   : > { %1360 = vmatpush3.bf16.msra.mxu0 %v1447_v0  ;;  %1415 = vmatpush3.bf16.msra.mxu1 %v1447_v0  ;;  %s1553_s26 = scalar_lea.vmem %s1713_s0, %s1146_s23  ;;  %v1453_v8 = vld [vmem:[%s1714_s1 + $0x8] sm:$0xff]   ;;  %v1454_v9 = vld [vmem:[%s1714_s1] sm:$0xff]   ;;  %s1595_s16 = scalar_lea.vmem %s1715_s2, %s1146_s23 }
   0xf   : > { %1361 = vmatprep.subr.bf16.mxu0 %v1448_v1  ;;  %1408 = vmatprep.subr.bf16.mxu1 %v1448_v1  ;;  %v1455_v4 = vld [vmem:[%s1553_s26] sm:$0xff]   ;;  %v1456_v10 = vld [vmem:[%s1553_s26 + $0x8] sm:$0xff]   ;;  %v1457_v12 = vld [vmem:[%s1553_s26 + $0x10] sm:$0xff]   ;;  %s229_s20 = scalar_lea.vmem %s1716_s3, %s1149_s17 }
  0x10   : > { %1375 = vmatprep.mubr.bf16.mxu0 %v1455_v4  ;;  %v1463_v7 = vld [vmem:[%s1553_s26 + $0x40] sm:$0xff]   ;;  %v1464_v11 = vld [vmem:[%s1553_s26 + $0x48] sm:$0xff]   ;;  %v1465_v13 = vld [vmem:[%s1553_s26 + $0x50] sm:$0xff]  }
  0x11   : > { %1391 = vmatprep.mubr.bf16.mxu1 %v1463_v7  ;;  %v1458_v14 = vld [vmem:[%s1553_s26 + $0x18] sm:$0xff]   ;;  %v1459_v16 = vld [vmem:[%s1553_s26 + $0x20] sm:$0xff]   ;;  %v1460_v18 = vld [vmem:[%s1553_s26 + $0x28] sm:$0xff]  }
  0x12   : > { %1362 = vmatpush3.bf16.msra.mxu0 %v1448_v1  ;;  %1416 = vmatpush3.bf16.msra.mxu1 %v1448_v1  ;;  %v1466_v15 = vld [vmem:[%s1553_s26 + $0x58] sm:$0xff]   ;;  %v1467_v17 = vld [vmem:[%s1553_s26 + $0x60] sm:$0xff]   ;;  %v1468_v19 = vld [vmem:[%s1553_s26 + $0x68] sm:$0xff]  }
  0x13   : > { %1363 = vmatprep.subr.bf16.mxu0 %v1449_v2  ;;  %1409 = vmatprep.subr.bf16.mxu1 %v1449_v2  ;;  %v1461_v20 = vld [vmem:[%s1553_s26 + $0x30] sm:$0xff]   ;;  %v1462_v22 = vld [vmem:[%s1553_s26 + $0x38] sm:$0xff]  }
  0x14   : > { %v1469_v21 = vld [vmem:[%s1553_s26 + $0x70] sm:$0xff]   ;;  %v1470_v23 = vld [vmem:[%s1553_s26 + $0x78] sm:$0xff]  }
  0x16   : > { %1364 = vmatpush3.bf16.msra.mxu0 %v1449_v2  ;;  %1417 = vmatpush3.bf16.msra.mxu1 %v1449_v2 }
  0x17   : > { %1365 = vmatprep.subr.bf16.mxu0 %v1450_v3  ;;  %1410 = vmatprep.subr.bf16.mxu1 %v1450_v3 }
  0x1a   : > { %1366 = vmatpush3.bf16.msra.mxu0 %v1450_v3  ;;  %1418 = vmatpush3.bf16.msra.mxu1 %v1450_v3 }
  0x1b   : > { %1367 = vmatprep.subr.bf16.mxu0 %v1451_v5  ;;  %1411 = vmatprep.subr.bf16.mxu1 %v1451_v5 }
  0x1e   : > { %1368 = vmatpush3.bf16.msra.mxu0 %v1451_v5  ;;  %1419 = vmatpush3.bf16.msra.mxu1 %v1451_v5 }
  0x1f   : > { %1369 = vmatprep.subr.bf16.mxu0 %v1452_v6  ;;  %1412 = vmatprep.subr.bf16.mxu1 %v1452_v6 }
  0x22   : > { %1370 = vmatpush3.bf16.msra.mxu0 %v1452_v6  ;;  %1420 = vmatpush3.bf16.msra.mxu1 %v1452_v6 }
  0x23   : > { %1371 = vmatprep.subr.bf16.mxu0 %v1453_v8  ;;  %1413 = vmatprep.subr.bf16.mxu1 %v1453_v8 }
  0x26   : > { %1372 = vmatpush3.bf16.msra.mxu0 %v1453_v8  ;;  %1421 = vmatpush3.bf16.msra.mxu1 %v1453_v8 }
  0x27   : > { %1373 = vmatprep.subr.bf16.mxu0 %v1454_v9  ;;  %1414 = vmatprep.subr.bf16.mxu1 %v1454_v9 }
  0x2a   : > { %1374 = vmatpush3.bf16.msra.mxu0 %v1454_v9  ;;  %1422 = vmatpush3.bf16.msra.mxu1 %v1454_v9 }
  0x2d   : > { %1376 = vmatmul.mubr.bf16.vlgmr.msra.gmra.mxu0 %v1456_v10  ;;  %1392 = vmatmul.mubr.bf16.vlgmr.msra.gmra.mxu1 %v1464_v11 }
  0x2e   : > { %1379 = vmatprep.mubr.bf16.mxu0 %v1457_v12  ;;  %1395 = vmatprep.mubr.bf16.mxu1 %v1465_v13 }
  0x35   : > { %1380 = vmatmul.mubr.bf16.gmra.mxu0 %v1458_v14  ;;  %1396 = vmatmul.mubr.bf16.gmra.mxu1 %v1466_v15 }
  0x36   : > { %1383 = vmatprep.mubr.bf16.mxu0 %v1459_v16  ;;  %1399 = vmatprep.mubr.bf16.mxu1 %v1467_v17 }
  0x3d   : > { %1384 = vmatmul.mubr.bf16.gmra.mxu0 %v1460_v18  ;;  %1400 = vmatmul.mubr.bf16.gmra.mxu1 %v1468_v19 }
  0x3e   : > { %1387 = vmatprep.mubr.bf16.mxu0 %v1461_v20  ;;  %1403 = vmatprep.mubr.bf16.mxu1 %v1469_v21 }
  0x45   : > { %1388 = vmatmul.mubr.bf16.gmra.mxu0 %v1462_v22  ;;  %1404 = vmatmul.mubr.bf16.gmra.mxu1 %v1470_v23 }
  0xed   : > { %v1377_v24 = vpop.f32.mrf.mxu0  ;;  %v1586_v25 = vpop.f32.mrf.mxu1 }
  0xee   : > { %v950_v41 = vmul.f32 %v1377_v24, %v1377_v24 }
  0xef   : > { %v525_v26 = vpop.f32.mrf.mxu0  ;;  %v1588_v27 = vpop.f32.mrf.mxu1 }
  0xf0   : > { %v948_v32 = vmul.f32 %v525_v26, %v525_v26 }
  0xf1   : > { %v1378_v28 = vpop.f32.mrf.mxu0  ;;  %v1597_v29 = vpop.f32.mrf.mxu1 }
  0xf2   : > { %v1248_v30 = vpack.c.bf16 %v1378_v28, %v1377_v24  ;;  %v1288_v31 = vpack.c.bf16 %v1597_v29, %v1586_v25  ;;  %v951_v46 = vmul.f32 %v1378_v28, %v1378_v28 }
  0xf3   : > { %v528_v33 = vpop.f32.mrf.mxu0  ;;  %v1601_v34 = vpop.f32.mrf.mxu1 }
  0xf4   : > { %1320 = vst [vmem:[%s1595_s16 + $0x8] sm:$0xff] %v1248_v30   ;;  %v1243_v35 = vpack.c.bf16 %v528_v33, %v525_v26  ;;  %v911_v36 = vadd.f32 %v528_v33, %v525_v26  ;;  %v949_v37 = vmul.f32 %v528_v33, %v528_v33  ;;  %1328 = vst [vmem:[%s1595_s16 + $0x48] sm:$0xff] %v1288_v31  }
  0xf5   : > { %v1283_v38 = vpack.c.bf16 %v1601_v34, %v1588_v27  ;;  %v1381_v39 = vpop.f32.mrf.mxu0  ;;  %v1607_v40 = vpop.f32.mrf.mxu1 }
  0xf6   : > { %1244 = vst [vmem:[%s1595_s16] sm:$0xff] %v1243_v35   ;;  %v912_v42 = vadd.f32 %v1377_v24, %v911_v36  ;;  %v980_v43 = vadd.f32 %v949_v37, %v948_v32  ;;  %v954_v1 = vmul.f32 %v1381_v39, %v1381_v39 }
  0xf7   : > { %1327 = vst [vmem:[%s1595_s16 + $0x40] sm:$0xff] %v1283_v38   ;;  %v541_v44 = vpop.f32.mrf.mxu0  ;;  %v1611_v45 = vpop.f32.mrf.mxu1 }
  0xf8   : > { %v981_v47 = vadd.f32 %v980_v43, %v950_v41  ;;  %v913_v48 = vadd.f32 %v1378_v28, %v912_v42  ;;  %v952_v52 = vmul.f32 %v541_v44, %v541_v44 }
  0xf9   : > { %v1382_v49 = vpop.f32.mrf.mxu0  ;;  %v1613_v50 = vpop.f32.mrf.mxu1 }
  0xfa   : > { %v914_v51 = vadd.f32 %v913_v48, %v541_v44  ;;  %v982_v53 = vadd.f32 %v981_v47, %v951_v46  ;;  %v1258_v54 = vpack.c.bf16 %v1382_v49, %v1381_v39  ;;  %v1298_v56 = vpack.c.bf16 %v1613_v50, %v1607_v40 }
  0xfb   : > { %v544_v55 = vpop.f32.mrf.mxu0  ;;  %v1617_v57 = vpop.f32.mrf.mxu1  ;;  %v955_v6 = vmul.f32 %v1382_v49, %v1382_v49 }
  0xfc   : > { %v983_v58 = vadd.f32 %v982_v53, %v952_v52  ;;  %1322 = vst [vmem:[%s1595_s16 + $0x18] sm:$0xff] %v1258_v54   ;;  %v1253_v59 = vpack.c.bf16 %v544_v55, %v541_v44  ;;  %v915_v60 = vadd.f32 %v914_v51, %v544_v55  ;;  %v953_v61 = vmul.f32 %v544_v55, %v544_v55 }
  0xfd   : > { %v1385_v62 = vpop.f32.mrf.mxu0  ;;  %1330 = vst [vmem:[%s1595_s16 + $0x58] sm:$0xff] %v1298_v56   ;;  %v1293_v63 = vpack.c.bf16 %v1617_v57, %v1611_v45  ;;  %v1623_v0 = vpop.f32.mrf.mxu1 }
  0xfe   : > { %1321 = vst [vmem:[%s1595_s16 + $0x10] sm:$0xff] %v1253_v59   ;;  %v916_v2 = vadd.f32 %v1381_v39, %v915_v60  ;;  %v984_v3 = vadd.f32 %v983_v58, %v953_v61  ;;  %v958_v26 = vmul.f32 %v1385_v62, %v1385_v62  ;;  %v964_v61 = vmul.f32 %v1588_v27, %v1588_v27 }
  0xff   : > { %v557_v4 = vpop.f32.mrf.mxu0  ;;  %1329 = vst [vmem:[%s1595_s16 + $0x50] sm:$0xff] %v1293_v63   ;;  %v1627_v5 = vpop.f32.mrf.mxu1 }
 0x100   : > { %v985_v7 = vadd.f32 %v984_v3, %v954_v1  ;;  %v917_v8 = vadd.f32 %v1382_v49, %v916_v2  ;;  %v956_v12 = vmul.f32 %v557_v4, %v557_v4  ;;  %v965_v2 = vmul.f32 %v1601_v34, %v1601_v34 }
 0x101   : > { %v1386_v9 = vpop.f32.mrf.mxu0  ;;  %v1629_v10 = vpop.f32.mrf.mxu1 }
 0x102   : > { %v918_v11 = vadd.f32 %v917_v8, %v557_v4  ;;  %v986_v13 = vadd.f32 %v985_v7, %v955_v6  ;;  %v1268_v14 = vpack.c.bf16 %v1386_v9, %v1385_v62  ;;  %v1308_v16 = vpack.c.bf16 %v1629_v10, %v1623_v0 }
 0x103   : > { %v560_v15 = vpop.f32.mrf.mxu0  ;;  %v1633_v17 = vpop.f32.mrf.mxu1  ;;  %v959_v33 = vmul.f32 %v1386_v9, %v1386_v9  ;;  %v967_v8 = vmul.f32 %v1597_v29, %v1597_v29 }
 0x104   : > { %v987_v18 = vadd.f32 %v986_v13, %v956_v12  ;;  %1324 = vst [vmem:[%s1595_s16 + $0x28] sm:$0xff] %v1268_v14   ;;  %v1263_v19 = vpack.c.bf16 %v560_v15, %v557_v4  ;;  %v919_v20 = vadd.f32 %v918_v11, %v560_v15  ;;  %v957_v21 = vmul.f32 %v560_v15, %v560_v15 }
 0x105   : > { %v1389_v22 = vpop.f32.mrf.mxu0  ;;  %1332 = vst [vmem:[%s1595_s16 + $0x68] sm:$0xff] %v1308_v16   ;;  %v1303_v23 = vpack.c.bf16 %v1633_v17, %v1627_v5  ;;  %v1639_v24 = vpop.f32.mrf.mxu1  ;;  %v966_v4 = vmul.f32 %v1586_v25, %v1586_v25  ;;  %v968_v12 = vmul.f32 %v1611_v45, %v1611_v45  ;;  %v969_v15 = vmul.f32 %v1617_v57, %v1617_v57 }
 0x106   : > { %1323 = vst [vmem:[%s1595_s16 + $0x20] sm:$0xff] %v1263_v19   ;;  %v920_v28 = vadd.f32 %v1385_v62, %v919_v20  ;;  %v988_v30 = vadd.f32 %v987_v18, %v957_v21  ;;  %v962_v54 = vmul.f32 %v1389_v22, %v1389_v22  ;;  %v972_v21 = vmul.f32 %v1627_v5, %v1627_v5 }
 0x107   : > { %v573_v31 = vpop.f32.mrf.mxu0  ;;  %1331 = vst [vmem:[%s1595_s16 + $0x60] sm:$0xff] %v1303_v23   ;;  %v1643_v32 = vpop.f32.mrf.mxu1 }
 0x108   : > { %v989_v35 = vadd.f32 %v988_v30, %v958_v26  ;;  %v921_v36 = vadd.f32 %v1386_v9, %v920_v28  ;;  %v960_v41 = vmul.f32 %v573_v31, %v573_v31  ;;  %v973_v26 = vmul.f32 %v1633_v17, %v1633_v17 }
 0x109   : > { %v1390_v37 = vpop.f32.mrf.mxu0  ;;  %v1645_v38 = vpop.f32.mrf.mxu1 }
 0x10a   : > { %v922_v39 = vadd.f32 %v921_v36, %v573_v31  ;;  %v990_v42 = vadd.f32 %v989_v35, %v959_v33  ;;  %v1278_v43 = vpack.c.bf16 %v1390_v37, %v1389_v22  ;;  %v1318_v46 = vpack.c.bf16 %v1645_v38, %v1639_v24 }
 0x10b   : > { %v576_v44 = vpop.f32.mrf.mxu0  ;;  %v640_v47 = vpop.f32.mrf.mxu1  ;;  %v963_v58 = vmul.f32 %v1390_v37, %v1390_v37  ;;  %v976_v35 = vmul.f32 %v1643_v32, %v1643_v32 }
 0x10c   : > { %v991_v48 = vadd.f32 %v990_v42, %v960_v41  ;;  %1326 = vst [vmem:[%s1595_s16 + $0x38] sm:$0xff] %v1278_v43   ;;  %v1273_v49 = vpack.c.bf16 %v576_v44, %v573_v31  ;;  %v923_v51 = vadd.f32 %v922_v39, %v576_v44  ;;  %v961_v52 = vmul.f32 %v576_v44, %v576_v44 }
 0x10d   : > { %1334 = vst [vmem:[%s1595_s16 + $0x78] sm:$0xff] %v1318_v46   ;;  %v1313_v53 = vpack.c.bf16 %v640_v47, %v1643_v32  ;;  %v977_v39 = vmul.f32 %v640_v47, %v640_v47 }
 0x10e   : > { %1325 = vst [vmem:[%s1595_s16 + $0x30] sm:$0xff] %v1273_v49   ;;  %v924_v55 = vadd.f32 %v1389_v22, %v923_v51  ;;  %v992_v56 = vadd.f32 %v991_v48, %v961_v52  ;;  %v1017_v51 = vlaneseq }
 0x10f   : > { %1333 = vst [vmem:[%s1595_s16 + $0x70] sm:$0xff] %v1313_v53  }
 0x110   : > { %v925_v59 = vadd.f32 %v1390_v37, %v924_v55  ;;  %v993_v60 = vadd.f32 %v992_v56, %v962_v54  ;;  %v1018_v55 = vshrl.u32 %v1017_v51, 7 }
 0x112   : > { %v994_v62 = vadd.f32 %v993_v60, %v963_v58  ;;  %v926_v63 = vadd.f32 %v925_v59, %v1588_v27  ;;  %vm1019_vm0 = vcmp.eq.s32.totalorder %v1018_v55, 0  ;;  %vm1021_vm1 = vcmp.eq.s32.totalorder %v1018_v55, 1 }
 0x114   : > { %v927_v1 = vadd.f32 %v926_v63, %v1601_v34  ;;  %v995_v3 = vadd.f32 %v994_v62, %v964_v61 }
 0x116   : > { %v928_v6 = vadd.f32 %v1586_v25, %v927_v1  ;;  %v996_v7 = vadd.f32 %v995_v3, %v965_v2  ;;  %v970_v25 = vmul.f32 %v1607_v40, %v1607_v40 }
 0x118   : > { %v997_v9 = vadd.f32 %v996_v7, %v966_v4  ;;  %v929_v11 = vadd.f32 %v1597_v29, %v928_v6  ;;  %v971_v29 = vmul.f32 %v1613_v50, %v1613_v50 }
 0x11a   : > { %v930_v27 = vadd.f32 %v929_v11, %v1611_v45  ;;  %v998_v13 = vadd.f32 %v997_v9, %v967_v8 }
 0x11c   : > { %v999_v34 = vadd.f32 %v998_v13, %v968_v12  ;;  %v931_v14 = vadd.f32 %v930_v27, %v1617_v57 }
 0x11e   : > { %v932_v16 = vadd.f32 %v1607_v40, %v931_v14  ;;  %v1000_v18 = vadd.f32 %v999_v34, %v969_v15  ;;  %v974_v40 = vmul.f32 %v1623_v0, %v1623_v0 }
 0x120   : > { %v1001_v19 = vadd.f32 %v1000_v18, %v970_v25  ;;  %v933_v20 = vadd.f32 %v1613_v50, %v932_v16  ;;  %v975_v50 = vmul.f32 %v1629_v10, %v1629_v10 }
 0x122   : > { %v934_v45 = vadd.f32 %v933_v20, %v1627_v5  ;;  %v1002_v22 = vadd.f32 %v1001_v19, %v971_v29 }
 0x124   : > { %v1003_v23 = vadd.f32 %v1002_v22, %v972_v21  ;;  %v935_v57 = vadd.f32 %v934_v45, %v1633_v17 }
 0x126   : > { %v936_v28 = vadd.f32 %v1623_v0, %v935_v57  ;;  %v1004_v30 = vadd.f32 %v1003_v23, %v973_v26  ;;  %v978_v0 = vmul.f32 %v1639_v24, %v1639_v24 }
 0x128   : > { %v1005_v31 = vadd.f32 %v1004_v30, %v974_v40  ;;  %v937_v33 = vadd.f32 %v1629_v10, %v936_v28  ;;  %v979_v10 = vmul.f32 %v1645_v38, %v1645_v38 }
 0x12a   : > { %v938_v5 = vadd.f32 %v937_v33, %v1643_v32  ;;  %v1006_v36 = vadd.f32 %v1005_v31, %v975_v50 }
 0x12c   : > { %v1007_v17 = vadd.f32 %v1006_v36, %v976_v35  ;;  %v939_v37 = vadd.f32 %v938_v5, %v640_v47 }
 0x12e   : > { %v940_v41 = vadd.f32 %v1639_v24, %v939_v37  ;;  %v1008_v42 = vadd.f32 %v1007_v17, %v977_v39 }
 0x130   : > { %v941_v43 = vadd.f32 %v1645_v38, %v940_v41  ;;  %v1009_v44 = vadd.f32 %v1008_v42, %v978_v0 }
 0x132   : > { %v942_v46 = vrot.slane %v941_v43, 4  ;;  %v1010_v48 = vadd.f32 %v1009_v44, %v979_v10 }
 0x134   : > { %v943_v32 = vadd.f32 %v942_v46, %v941_v43  ;;  %v1011_v49 = vrot.slane %v1010_v48, 4 }
 0x136   : > { %v944_v47 = vrot.slane %v943_v32, 2  ;;  %v1012_v52 = vadd.f32 %v1011_v49, %v1010_v48 }
 0x138   : > { %v945_v53 = vadd.f32 %v944_v47, %v943_v32  ;;  %v1013_v54 = vrot.slane %v1012_v52, 2 }
 0x13a   : > { %v946_v24 = vrot.slane %v945_v53, 1  ;;  %v1014_v56 = vadd.f32 %v1013_v54, %v1012_v52 }
 0x13c   : > { %v947_v58 = vadd.f32 %v946_v24, %v945_v53  ;;  %v1015_v59 = vrot.slane %v1014_v56, 1 }
 0x13e   : > { %v1016_v38 = vadd.f32 %v1015_v59, %v1014_v56  ;;  %v1020_v60 = vsel %vm1019_vm0, %v947_v58, 0.0 }
 0x140   : > { %v1022_v61 = vsel %vm1021_vm1, %v1016_v38, 0.0 }
 0x141   : > { %v1023_v62 = vadd.f32 %v1022_v61, %v1020_v60 }
 0x143   : > { %1024 = vst [vmem:[%s229_s20] sm:$0xff] %v1023_v62 }
 0x144 PF: > { %s14_s14 = sadd.s32 1, %s1493_s14   ;;  %s1717_s12 = smov %s1489_s13 }
 0x145   : > { %p11_p6 = scmp.ge.s32.totalorder %s14_s14, 4   ;;  %s1718_s13 = smov %s1720_s15 }
 0x147   :  { %13 = sbr.rel (!%p11_p6) target bundleno = 2 (0x2), region = 81 }

// kernel: conv_block_forward.3
= control target key start
LH: loop header
LB: loop body
LE: loop exit
PB: predicated region body
PF: predicated region fallthrough
CT: control target
= control target key end

     0   :  { %s699_s12 = smov 0   ;;  %s701_s13 = smov 0   ;;  %s828_s0 = inlined_call_operand.vmem [shape: bf16[2,256,128], index: 0, kind: input, shape index: {}]   ;;  %s829_s1 = inlined_call_operand.vmem [shape: f32[1,128], index: 1, kind: input, shape index: {}]   ;;  %s830_s2 = inlined_call_operand.vmem [shape: f32[1,128], index: 2, kind: input, shape index: {}]   ;;  %s831_s3 = inlined_call_operand.vmem [shape: f32[2,8,256], index: 3, kind: output, shape index: {}]  }
   0x1   :  { %s703_s14 = smov 0  }
   0x2 LB: > { %s25_s15 = sadd.s32 1, %s673_s13  ;;  %p541_p0 = scmp.ge.s32.totalorder %s677_s14, 1  ;;  %s677_s14 = sphi %s703_s14, %s13_s14   ;;  %s673_s13 = sphi %s701_s13, %s833_s13   ;;  %s669_s12 = sphi %s699_s12, %s832_s12  }
   0x3   : > { %p27_p1 = scmp.ge.s32.totalorder %s25_s15, 2  ;;  %p158_p2 = scmp.lt.s32.totalorder %s677_s14, 3 }
   0x5   : > { %s835_s15 = smov (%p27_p1, %s25_s15), 0  ;;  %p159_p3 = pnand %p541_p0, %p158_p2 }
   0x6   : > { %p191_p4 = scmp.lt.s32.totalorder (!%p159_p3), %s669_s12, 1 }
   0x7   : > { %162 = sbr.rel (%p159_p3) target bundleno = 151 (0x97), region = 32 }
   0xc   : > { %s837_s12 = smov (!%p191_p4, %s669_s12), 1  ;;  %v728_v0 = vld [vmem:[%s829_s1] ss:$0 sm:$0xff] }
   0xd   : > { %s550_s16 = sshll.u32 %s837_s12, 7  ;;  %v737_v9 = vld [vmem:[%s830_s2] ss:$0 sm:$0xff]  ;;  %s551_s24 = sshll.u32 %s837_s12, 4 }
   0xe   : > { %s723_s19 = scalar_lea.vmem %s828_s0, %s550_s16  ;;  %s208_s27 = scalar_lea.vmem %s831_s3, %s551_s24 }
   0xf   : > { %v623_v1 = vld [vmem:[%s723_s19 + $0x40] sm:$0xff]   ;;  %v624_v3 = vld [vmem:[%s723_s19 + $0x48] sm:$0xff]   ;;  %v625_v24 = vld [vmem:[%s723_s19 + $0x50] sm:$0xff]  }
  0x10   : > { %v553_v2 = vld [vmem:[%s723_s19] sm:$0xff]   ;;  %v586_v4 = vunpack.c.l.bf16 %v623_v1  ;;  %v587_v6 = vunpack.c.h.bf16 %v623_v1  ;;  %v616_v8 = vld [vmem:[%s723_s19 + $0x8] sm:$0xff]   ;;  %v590_v10 = vunpack.c.l.bf16 %v624_v3  ;;  %v591_v18 = vunpack.c.h.bf16 %v624_v3  ;;  %v617_v25 = vld [vmem:[%s723_s19 + $0x10] sm:$0xff]  }
  0x11   : > { %v554_v5 = vunpack.c.l.bf16 %v553_v2  ;;  %v555_v7 = vunpack.c.h.bf16 %v553_v2  ;;  %v558_v11 = vunpack.c.l.bf16 %v616_v8  ;;  %v559_v19 = vunpack.c.h.bf16 %v616_v8  ;;  %v626_v44 = vld [vmem:[%s723_s19 + $0x58] sm:$0xff]   ;;  %v627_v62 = vld [vmem:[%s723_s19 + $0x60] sm:$0xff]  }
  0x12   : > { %v297_v12 = vmul.f32 %v586_v4, %v728_v0  ;;  %v298_v14 = vmul.f32 %v587_v6, %v728_v0  ;;  %v299_v16 = vmul.f32 %v590_v10, %v728_v0  ;;  %v300_v30 = vmul.f32 %v591_v18, %v728_v0  ;;  %v618_v45 = vld [vmem:[%s723_s19 + $0x18] sm:$0xff]   ;;  %v619_v63 = vld [vmem:[%s723_s19 + $0x20] sm:$0xff]   ;;  %v628_v18 = vld [vmem:[%s723_s19 + $0x68] sm:$0xff]  }
  0x13   : > { %v281_v13 = vmul.f32 %v554_v5, %v728_v0  ;;  %v282_v15 = vmul.f32 %v555_v7, %v728_v0  ;;  %v283_v17 = vmul.f32 %v558_v11, %v728_v0  ;;  %v284_v31 = vmul.f32 %v559_v19, %v728_v0  ;;  %v620_v19 = vld [vmem:[%s723_s19 + $0x28] sm:$0xff]  }
  0x14   : > { %v336_v20 = vadd.f32 %v737_v9, %v297_v12  ;;  %v337_v22 = vadd.f32 %v737_v9, %v298_v14  ;;  %v338_v28 = vadd.f32 %v737_v9, %v299_v16  ;;  %v594_v34 = vunpack.c.l.bf16 %v625_v24 }
  0x15   : > { %v320_v21 = vadd.f32 %v737_v9, %v281_v13  ;;  %v321_v23 = vadd.f32 %v737_v9, %v282_v15  ;;  %v322_v29 = vadd.f32 %v737_v9, %v283_v17  ;;  %v562_v35 = vunpack.c.l.bf16 %v617_v25 }
  0x16   : > { %v368_v26 = vmax.f32 %v336_v20, 0.0  ;;  %v369_v32 = vmax.f32 %v337_v22, 0.0  ;;  %v370_v36 = vmax.f32 %v338_v28, 0.0  ;;  %v339_v37 = vadd.f32 %v737_v9, %v300_v30 }
  0x17   : > { %v352_v27 = vmax.f32 %v320_v21, 0.0  ;;  %v353_v33 = vmax.f32 %v321_v23, 0.0  ;;  %v323_v38 = vadd.f32 %v737_v9, %v284_v31  ;;  %v595_v39 = vunpack.c.h.bf16 %v625_v24 }
  0x18   : > { %416 = vxpose.xlu1.b32.start [1/16] (narrow) %v368_v26, 8  ;;  %v354_v40 = vmax.f32 %v322_v29, 0.0  ;;  %v301_v41 = vmul.f32 %v594_v34, %v728_v0  ;;  %v285_v42 = vmul.f32 %v562_v35, %v728_v0  ;;  %v563_v43 = vunpack.c.h.bf16 %v617_v25 }
  0x19   : > { %384 = vxpose.xlu0.b32.start [1/16] (narrow) %v352_v27, 8  ;;  %v371_v46 = vmax.f32 %v339_v37, 0.0  ;;  %v302_v47 = vmul.f32 %v595_v39, %v728_v0  ;;  %v598_v48 = vunpack.c.l.bf16 %v626_v44  ;;  %v566_v49 = vunpack.c.l.bf16 %v618_v45  ;;  %v621_v37 = vld [vmem:[%s723_s19 + $0x30] sm:$0xff]  }
  0x1a   : > { %v355_v50 = vmax.f32 %v323_v38, 0.0  ;;  %v340_v51 = vadd.f32 %v737_v9, %v301_v41  ;;  %v324_v52 = vadd.f32 %v737_v9, %v285_v42  ;;  %v286_v53 = vmul.f32 %v563_v43, %v728_v0 }
  0x1b   : > { %v303_v54 = vmul.f32 %v598_v48, %v728_v0  ;;  %v287_v55 = vmul.f32 %v566_v49, %v728_v0  ;;  %v599_v56 = vunpack.c.h.bf16 %v626_v44  ;;  %v567_v57 = vunpack.c.h.bf16 %v618_v45 }
  0x1c   : > { %417 = vxpose.xlu1.b32.cont [2/16] (narrow) %v369_v32, 8  ;;  %v372_v58 = vmax.f32 %v340_v51, 0.0  ;;  %v356_v59 = vmax.f32 %v324_v52, 0.0  ;;  %v341_v60 = vadd.f32 %v737_v9, %v302_v47  ;;  %v325_v61 = vadd.f32 %v737_v9, %v286_v53 }
  0x1d   : > { %385 = vxpose.xlu0.b32.cont [2/16] (narrow) %v353_v33, 8  ;;  %v342_v1 = vadd.f32 %v737_v9, %v303_v54  ;;  %v304_v2 = vmul.f32 %v599_v56, %v728_v0  ;;  %v288_v3 = vmul.f32 %v567_v57, %v728_v0  ;;  %v602_v4 = vunpack.c.l.bf16 %v627_v62  ;;  %v630_v54 = vld [vmem:[%s723_s19 + $0x78] sm:$0xff]  }
  0x1e   : > { %v373_v5 = vmax.f32 %v341_v60, 0.0  ;;  %v357_v6 = vmax.f32 %v325_v61, 0.0  ;;  %v326_v7 = vadd.f32 %v737_v9, %v287_v55  ;;  %v570_v8 = vunpack.c.l.bf16 %v619_v63  ;;  %v622_v55 = vld [vmem:[%s723_s19 + $0x38] sm:$0xff]  }
  0x1f   : > { %v374_v10 = vmax.f32 %v342_v1, 0.0  ;;  %v343_v11 = vadd.f32 %v737_v9, %v304_v2  ;;  %v327_v12 = vadd.f32 %v737_v9, %v288_v3  ;;  %v305_v13 = vmul.f32 %v602_v4, %v728_v0 }
  0x20   : > { %418 = vxpose.xlu1.b32.cont [3/16] (narrow) %v370_v36, 8  ;;  %v358_v14 = vmax.f32 %v326_v7, 0.0  ;;  %v289_v15 = vmul.f32 %v570_v8, %v728_v0  ;;  %v603_v16 = vunpack.c.h.bf16 %v627_v62  ;;  %v571_v17 = vunpack.c.h.bf16 %v619_v63  ;;  %v629_v36 = vld [vmem:[%s723_s19 + $0x70] sm:$0xff]  }
  0x21   : > { %386 = vxpose.xlu0.b32.cont [3/16] (narrow) %v354_v40, 8  ;;  %v375_v20 = vmax.f32 %v343_v11, 0.0  ;;  %v344_v21 = vadd.f32 %v737_v9, %v305_v13  ;;  %v606_v22 = vunpack.c.l.bf16 %v628_v18  ;;  %v574_v23 = vunpack.c.l.bf16 %v620_v19 }
  0x22   : > { %v359_v24 = vmax.f32 %v327_v12, 0.0  ;;  %v328_v25 = vadd.f32 %v737_v9, %v289_v15  ;;  %v306_v26 = vmul.f32 %v603_v16, %v728_v0  ;;  %v290_v27 = vmul.f32 %v571_v17, %v728_v0 }
  0x23   : > { %v307_v28 = vmul.f32 %v606_v22, %v728_v0  ;;  %v291_v29 = vmul.f32 %v574_v23, %v728_v0  ;;  %v607_v30 = vunpack.c.h.bf16 %v628_v18  ;;  %v575_v31 = vunpack.c.h.bf16 %v620_v19 }
  0x24   : > { %419 = vxpose.xlu1.b32.cont [4/16] (narrow) %v371_v46, 8  ;;  %v376_v32 = vmax.f32 %v344_v21, 0.0  ;;  %v360_v33 = vmax.f32 %v328_v25, 0.0  ;;  %v345_v34 = vadd.f32 %v737_v9, %v306_v26  ;;  %v329_v35 = vadd.f32 %v737_v9, %v290_v27 }
  0x25   : > { %387 = vxpose.xlu0.b32.cont [4/16] (narrow) %v355_v50, 8  ;;  %v346_v38 = vadd.f32 %v737_v9, %v307_v28  ;;  %v308_v39 = vmul.f32 %v607_v30, %v728_v0  ;;  %v292_v40 = vmul.f32 %v575_v31, %v728_v0  ;;  %v610_v41 = vunpack.c.l.bf16 %v629_v36 }
  0x26   : > { %v377_v42 = vmax.f32 %v345_v34, 0.0  ;;  %v361_v43 = vmax.f32 %v329_v35, 0.0  ;;  %v330_v44 = vadd.f32 %v737_v9, %v291_v29  ;;  %v578_v45 = vunpack.c.l.bf16 %v621_v37 }
  0x27   : > { %v378_v46 = vmax.f32 %v346_v38, 0.0  ;;  %v347_v47 = vadd.f32 %v737_v9, %v308_v39  ;;  %v331_v48 = vadd.f32 %v737_v9, %v292_v40  ;;  %v309_v49 = vmul.f32 %v610_v41, %v728_v0 }
  0x28   : > { %420 = vxpose.xlu1.b32.cont [5/16] (narrow) %v372_v58, 8  ;;  %v362_v50 = vmax.f32 %v330_v44, 0.0  ;;  %v293_v51 = vmul.f32 %v578_v45, %v728_v0  ;;  %v611_v52 = vunpack.c.h.bf16 %v629_v36  ;;  %v579_v53 = vunpack.c.h.bf16 %v621_v37 }
  0x29   : > { %388 = vxpose.xlu0.b32.cont [5/16] (narrow) %v356_v59, 8  ;;  %v379_v56 = vmax.f32 %v347_v47, 0.0  ;;  %v348_v57 = vadd.f32 %v737_v9, %v309_v49  ;;  %v614_v58 = vunpack.c.l.bf16 %v630_v54  ;;  %v582_v59 = vunpack.c.l.bf16 %v622_v55 }
  0x2a   : > { %v363_v60 = vmax.f32 %v331_v48, 0.0  ;;  %v332_v61 = vadd.f32 %v737_v9, %v293_v51  ;;  %v310_v62 = vmul.f32 %v611_v52, %v728_v0  ;;  %v294_v63 = vmul.f32 %v579_v53, %v728_v0 }
  0x2b   : > { %v311_v1 = vmul.f32 %v614_v58, %v728_v0  ;;  %v295_v2 = vmul.f32 %v582_v59, %v728_v0  ;;  %v615_v3 = vunpack.c.h.bf16 %v630_v54  ;;  %v583_v4 = vunpack.c.h.bf16 %v622_v55 }
  0x2c   : > { %421 = vxpose.xlu1.b32.cont [6/16] (narrow) %v373_v5, 8  ;;  %v380_v5 = vmax.f32 %v348_v57, 0.0  ;;  %v349_v7 = vadd.f32 %v737_v9, %v310_v62  ;;  %v333_v8 = vadd.f32 %v737_v9, %v294_v63 }
  0x2d   : > { %389 = vxpose.xlu0.b32.cont [6/16] (narrow) %v357_v6, 8  ;;  %v364_v6 = vmax.f32 %v332_v61, 0.0  ;;  %v296_v11 = vmul.f32 %v583_v4, %v728_v0  ;;  %v334_v15 = vadd.f32 %v737_v9, %v295_v2 }
  0x2e   : > { %v381_v12 = vmax.f32 %v349_v7, 0.0  ;;  %v365_v13 = vmax.f32 %v333_v8, 0.0 }
  0x2f   : > { %v366_v17 = vmax.f32 %v334_v15, 0.0  ;;  %v335_v19 = vadd.f32 %v737_v9, %v296_v11 }
  0x30   : > { %422 = vxpose.xlu1.b32.cont [7/16] (narrow) %v374_v10, 8  ;;  %v312_v10 = vmul.f32 %v615_v3, %v728_v0 }
  0x31   : > { %390 = vxpose.xlu0.b32.cont [7/16] (narrow) %v358_v14, 8  ;;  %v350_v14 = vadd.f32 %v737_v9, %v311_v1 }
  0x32   : > { %v351_v18 = vadd.f32 %v737_v9, %v312_v10 }
  0x33   : > { %v382_v16 = vmax.f32 %v350_v14, 0.0 }
  0x34   : > { %423 = vxpose.xlu1.b32.cont [8/16] (narrow) %v375_v20, 8  ;;  %v383_v0 = vmax.f32 %v351_v18, 0.0  ;;  %v367_v20 = vmax.f32 %v335_v19, 0.0 }
  0x35   : > { %391 = vxpose.xlu0.b32.cont [8/16] (narrow) %v359_v24, 8 }
  0x38   : > { %424 = vxpose.xlu1.b32.cont [9/16] (narrow) %v376_v32, 8 }
  0x39   : > { %392 = vxpose.xlu0.b32.cont [9/16] (narrow) %v360_v33, 8 }
  0x3c   : > { %425 = vxpose.xlu1.b32.cont [10/16] (narrow) %v377_v42, 8 }
  0x3d   : > { %393 = vxpose.xlu0.b32.cont [10/16] (narrow) %v361_v43, 8 }
  0x40   : > { %426 = vxpose.xlu1.b32.cont [11/16] (narrow) %v378_v46, 8 }
  0x41   : > { %394 = vxpose.xlu0.b32.cont [11/16] (narrow) %v362_v50, 8 }
  0x44   : > { %427 = vxpose.xlu1.b32.cont [12/16] (narrow) %v379_v56, 8 }
  0x45   : > { %395 = vxpose.xlu0.b32.cont [12/16] (narrow) %v363_v60, 8 }
  0x48   : > { %428 = vxpose.xlu1.b32.cont [13/16] (narrow) %v380_v5, 8 }
  0x49   : > { %396 = vxpose.xlu0.b32.cont [13/16] (narrow) %v364_v6, 8 }
  0x4c   : > { %429 = vxpose.xlu1.b32.cont [14/16] (narrow) %v381_v12, 8 }
  0x4d   : > { %397 = vxpose.xlu0.b32.cont [14/16] (narrow) %v365_v13, 8 }
  0x50   : > { %430 = vxpose.xlu1.b32.cont [15/16] (narrow) %v382_v16, 8 }
  0x51   : > { %398 = vxpose.xlu0.b32.cont [15/16] (narrow) %v366_v17, 8 }
  0x54   : > { %431 = vxpose.xlu1.b32.end [16/16] (narrow) %v383_v0, 8 }
  0x55   : > { %399 = vxpose.xlu0.b32.end [16/16] (narrow) %v367_v20, 8 }
  0x94   : > { %v432_v21 = vpop.trf.xlu1 }
  0x95   : > { %v400_v22 = vpop.trf.xlu0  ;;  %449 = vst [vmem:[%s208_s27 + $0x8] sm:$0xff] %v432_v21 }
  0x96   : > { %448 = vst [vmem:[%s208_s27] sm:$0xff] %v400_v22 }
  0x97 PF: > { %s13_s14 = sadd.s32 1, %s677_s14   ;;  %s832_s12 = smov %s673_s13 }
  0x98   : > { %p10_p5 = scmp.ge.s32.totalorder %s13_s14, 4   ;;  %s833_s13 = smov %s835_s15 }
  0x9a   :  { %12 = sbr.rel (!%p10_p5) target bundleno = 2 (0x2), region = 62 }

</bundles_post_ra>
